<compile_context>
chip_gen: v7x
topology: tpu7x:2x2x1
jax: 0.10.0
libtpu: 0.0.40
codegen_flags: <defaults>
</compile_context>

<pallas_src>
import math
import functools

import jax
import jax.numpy as jnp
from jax.experimental import pallas as pl
from jax.experimental.pallas import tpu as pltpu


# ----------------------------- config (small, consistent with module) --------
B = 2              # batch
TA = 8             # horizon_steps
DA = 4             # action_dim
TO = 2             # obs horizon
DO = 8             # obs dim  -> cond_dim = TO*DO = 16
TIME_DIM = 16
MLP_DIMS = (256, 256)          # mlp_dims default
ACT_TOTAL = TA * DA            # action_dim * horizon_steps = 32
COND_DIM = TO * DO             # 16
INPUT_DIM = ACT_TOTAL + TIME_DIM + COND_DIM   # cat order: [action, time_emb, cond_emb]
HALF = TIME_DIM // 2
_EMB_SCALE = math.log(10000.0) / (HALF - 1)
SUBLANE = 8                    # f32 sublane height


def _round_up(x, m):
    return ((x + m - 1) // m) * m


# ----------------------------- in-kernel math ---------------------------------
def _dot(a, w):
    # bf16 operands on the MXU, f32 accumulation.
    return jnp.dot(a.astype(w.dtype), w, preferred_element_type=jnp.float32)


def _mish_k(x):
    # x * tanh(softplus(x)) with torch's Softplus threshold=20.
    # Single transcendental: tanh(softplus(x)) = ((1+e)^2 - 1) / ((1+e)^2 + 1), e=exp(x).
    # approx reciprocal = single EUP op in an otherwise-free slot (vs f32 divide).
    e = jnp.exp(jnp.minimum(x, 20.0))
    n = (1.0 + e) * (1.0 + e)
    y = x * (n - 1.0) * pl.reciprocal(n + 1.0, approx=True)
    return jnp.where(x > 20.0, x, y)


def _time_embed(t_col, wt1s, wt1c, bt1, wt2, bt2):
    """SinusoidalPosEmb -> Linear -> Mish -> Linear on a (rows, 1) f32 column.

    The iota+exp frequency build runs once per pallas_call (hoisted out of the
    sampler's per-step loop), so its EUP cost is amortized away."""
    rows = t_col.shape[0]
    idx = jax.lax.broadcasted_iota(jnp.int32, (rows, HALF), 1).astype(jnp.float32)
    freqs = jnp.exp(idx * (-_EMB_SCALE))
    arg = t_col * freqs
    # cat([sin, cos]) @ Wt1 == sin @ Wt1[:HALF] + cos @ Wt1[HALF:]
    h = _mish_k(_dot(jnp.sin(arg), wt1s) + _dot(jnp.cos(arg), wt1c) + bt1)
    return _dot(h, wt2) + bt2


# ----------------------------- Pallas kernels ---------------------------------
def flow_mlp_fwd_kernel(t_ref, a_ref, s_ref,
                        wt1s_ref, wt1c_ref, bt1_ref, wt2_ref, bt2_ref,
                        w0a_ref, w0t_ref, w0c_ref, b0_ref, w1_ref, b1_ref, w2_ref, b2_ref,
                        out_ref):
    te = _time_embed(t_ref[...], wt1s_ref[...], wt1c_ref[...], bt1_ref[...],
                     wt2_ref[...], bt2_ref[...])
    # cat([action, time_emb, cond]) @ W0 == split matmuls, one f32 accumulation chain.
    s0 = (_dot(a_ref[...], w0a_ref[...]) + _dot(te, w0t_ref[...])
          + _dot(s_ref[...], w0c_ref[...]) + b0_ref[...])
    h0 = _mish_k(s0)
    h1 = _mish_k(_dot(h0, w1_ref[...]) + b1_ref[...])
    out_ref[...] = _dot(h1, w2_ref[...]) + b2_ref[...]      # out_activation='Identity'


def flow_sample_kernel(z_ref, state_ref,
                       wt1s_ref, wt1c_ref, bt1_ref, wt2_ref, bt2_ref,
                       w0a_ref, w0t_ref, w0c_ref, b0_ref, w1_ref, b1_ref, w2_ref, b2_ref,
                       out_ref,
                       *, n_steps, clip_intermediate, act_lo, act_hi):
    """Whole Euler integration (sample_action, save_chains=False) in one invocation."""
    # ---- hoisted, step-invariant work (runs once per call) --------------------
    n_pad = _round_up(max(n_steps, 1), SUBLANE)
    denom = float(max(n_steps - 1, 1))            # torch.linspace(0, 1, 1) == [0.0]
    t_col = (jax.lax.broadcasted_iota(jnp.int32, (n_pad, 1), 0).astype(jnp.float32)
             * (1.0 / denom))                                     # t_i = i / (n-1)
    te_all = _time_embed(t_col, wt1s_ref[...], wt1c_ref[...], bt1_ref[...],
                         wt2_ref[...], bt2_ref[...])              # (n_pad, TIME_DIM)
    time_table = _dot(te_all, w0t_ref[...])                       # (n_pad, 256)
    const0 = _dot(state_ref[...], w0c_ref[...]) + b0_ref[...]     # (B, 256) invariant

    w0a, w1, w2 = w0a_ref[...], w1_ref[...], w2_ref[...]
    b1, b2 = b1_ref[...], b2_ref[...]
    dt = 1.0 / n_steps

    # ---- fully unrolled Euler loop; x carried in vregs, single HBM store ------
    x = z_ref[...]
    for i in range(n_steps):                       # static unroll, static table row
        h0 = _mish_k(_dot(x, w0a) + time_table[i:i + 1, :] + const0)
        h1 = _mish_k(_dot(h0, w1) + b1)
        vel = _dot(h1, w2) + b2
        x = x + vel * dt
        if clip_intermediate:                      # static python bool
            x = jnp.clip(x, act_lo, act_hi)
    out_ref[...] = jnp.clip(x, act_lo, act_hi)     # final clamp (i == n-1 in torch)


# ----------------------------- wrappers ---------------------------------------
def _prep_weights(params):
    """Split weight matrices to replace concatenations; cast weights to bf16."""
    wt1, bt1, wt2, bt2, w0, b0, w1, b1, w2, b2 = params
    bf16 = jnp.bfloat16
    wt1s, wt1c = wt1[:HALF].astype(bf16), wt1[HALF:].astype(bf16)
    w0a = w0[:ACT_TOTAL].astype(bf16)
    w0t = w0[ACT_TOTAL:ACT_TOTAL + TIME_DIM].astype(bf16)
    w0c = w0[ACT_TOTAL + TIME_DIM:].astype(bf16)
    return (wt1s, wt1c, bt1, wt2.astype(bf16), bt2,
            w0a, w0t, w0c, b0, w1.astype(bf16), b1, w2.astype(bf16), b2)


_VMEM = pl.BlockSpec(memory_space=pltpu.MemorySpace.VMEM)


@jax.jit
def flow_mlp_forward(action, time, state, params):
    """action: (B, Ta, Da), time: (B,) (or scalar), state: (B, To, Do) -> vel: (B, Ta, Da)."""
    b = action.shape[0]
    a_flat = action.reshape(b, -1).astype(jnp.float32)
    s_flat = state.reshape(b, -1).astype(jnp.float32)
    if not hasattr(time, "ndim") or time.ndim == 0:
        t_col = jnp.full((b, 1), time, jnp.float32)
    else:
        t_col = time.reshape(b, 1).astype(jnp.float32)

    inputs = (t_col, a_flat, s_flat) + _prep_weights(params)
    out = pl.pallas_call(
        flow_mlp_fwd_kernel,
        out_shape=jax.ShapeDtypeStruct((b, ACT_TOTAL), jnp.float32),
        in_specs=[_VMEM] * len(inputs),
        out_specs=_VMEM,
    )(*inputs)
    return out.reshape(b, TA, DA)


@functools.partial(jax.jit, static_argnames=("inference_steps", "act_range",
                                              "clip_intermediate_actions"))
def flow_mlp_sample(z, state, params, *, inference_steps=10,
                    act_range=(-1.0, 1.0), clip_intermediate_actions=False):
    """sample_action (Euler integration, save_chains=False) fused into ONE pallas_call."""
    b = z.shape[0]
    z_flat = z.reshape(b, -1).astype(jnp.float32)
    state_flat = state.reshape(b, -1).astype(jnp.float32)
    inputs = (z_flat, state_flat) + _prep_weights(params)

    kernel = functools.partial(
        flow_sample_kernel,
        n_steps=int(inference_steps),
        clip_intermediate=bool(clip_intermediate_actions),
        act_lo=float(act_range[0]), act_hi=float(act_range[1]))

    out = pl.pallas_call(
        kernel,
        out_shape=jax.ShapeDtypeStruct((b, ACT_TOTAL), jnp.float32),
        in_specs=[_VMEM] * len(inputs),
        out_specs=_VMEM,
    )(*inputs)
    return out.reshape(b, TA, DA)


# ----------------------------- pure-JAX references ----------------------------
def _mish_ref(x):
    e = jnp.exp(jnp.minimum(x, 20.0))
    n = (1.0 + e) * (1.0 + e)
    return jnp.where(x > 20.0, x, x * (n - 1.0) / (n + 1.0))


def _ref_dot(a, w, wdt):
    return jnp.dot(a.astype(wdt), w.astype(wdt), preferred_element_type=jnp.float32)


def flow_mlp_reference(action, time, state, params, weight_dtype=jnp.float32):
    wt1, bt1, wt2, bt2, w0, b0, w1, b1, w2, b2 = params
    b = action.shape[0]
    a = action.reshape(b, -1).astype(jnp.float32)
    s = state.reshape(b, -1).astype(jnp.float32)
    freqs = jnp.exp(jnp.arange(HALF, dtype=jnp.float32) * (-_EMB_SCALE))
    arg = time.reshape(b, 1).astype(jnp.float32) * freqs[None, :]
    emb = jnp.concatenate([jnp.sin(arg), jnp.cos(arg)], axis=-1)
    h = _mish_ref(_ref_dot(emb, wt1, weight_dtype) + bt1)
    te = _ref_dot(h, wt2, weight_dtype) + bt2
    feat = jnp.concatenate([a, te, s], axis=-1)
    h0 = _mish_ref(_ref_dot(feat, w0, weight_dtype) + b0)
    h1 = _mish_ref(_ref_dot(h0, w1, weight_dtype) + b1)
    return (_ref_dot(h1, w2, weight_dtype) + b2).reshape(b, TA, DA)


def flow_sample_reference(z, state, params, *, inference_steps=10,
                          act_range=(-1.0, 1.0), clip_intermediate_actions=False,
                          weight_dtype=jnp.float32):
    b = z.shape[0]
    x = z.reshape(b, -1).astype(jnp.float32)
    dt = 1.0 / inference_steps
    denom = max(inference_steps - 1, 1)
    for i in range(inference_steps):
        t = jnp.full((b,), i / denom, jnp.float32)
        v = flow_mlp_reference(x.reshape(b, TA, DA), t, state, params,
                               weight_dtype).reshape(b, -1)
        x = x + v * dt
        if clip_intermediate_actions or i == inference_steps - 1:
            x = jnp.clip(x, act_range[0], act_range[1])
    return x.reshape(b, TA, DA)


# ----------------------------- deterministic params --------------------------
def init_params(key):
    def dense(k, fan_in, fan_out):
        kw, kb = jax.random.split(k)
        bound = 1.0 / math.sqrt(fan_in)
        w = jax.random.uniform(kw, (fan_in, fan_out), jnp.float32, -bound, bound)
        b = jax.random.uniform(kb, (1, fan_out), jnp.float32, -bound, bound)
        return w, b

    keys = jax.random.split(key, 5)
    wt1, bt1 = dense(keys[0], TIME_DIM, TIME_DIM * 2)
    wt2, bt2 = dense(keys[1], TIME_DIM * 2, TIME_DIM)
    w0, b0 = dense(keys[2], INPUT_DIM, MLP_DIMS[0])
    w1, b1 = dense(keys[3], MLP_DIMS[0], MLP_DIMS[1])
    w2, b2 = dense(keys[4], MLP_DIMS[1], ACT_TOTAL)
    return (wt1, bt1, wt2, bt2, w0, b0, w1, b1, w2, b2)


if __name__ == "__main__":
    key = jax.random.PRNGKey(0)
    k_act, k_time, k_state, k_params, k_z = jax.random.split(key, 5)

    action = jax.random.normal(k_act, (B, TA, DA), jnp.float32)
    time = jax.random.uniform(k_time, (B,), jnp.float32)
    state = jax.random.normal(k_state, (B, TO, DO), jnp.float32)
    z = jax.random.normal(k_z, (B, TA, DA), jnp.float32)
    params = init_params(k_params)

    # ---- single forward step (module.forward) --------------------------------
    vel = jax.block_until_ready(flow_mlp_forward(action, time, state, params))
    assert vel.shape == (B, TA, DA)
    ref_matched = flow_mlp_reference(action, time, state, params, weight_dtype=jnp.bfloat16)
    assert jnp.allclose(vel, ref_matched, atol=5e-3, rtol=5e-3), \
        "forward mismatch vs matched (bf16-weight) JAX reference"
    ref_f32 = flow_mlp_reference(action, time, state, params, weight_dtype=jnp.float32)
    assert jnp.allclose(vel, ref_f32, atol=5e-2, rtol=5e-2), \
        "forward drifted too far from f32 reference"

    # ---- fused Euler sampler (sample_action) ----------------------------------
    n_steps = 10
    act = jax.block_until_ready(flow_mlp_sample(
        z, state, params, inference_steps=n_steps,
        act_range=(-1.0, 1.0), clip_intermediate_actions=False))
    assert act.shape == (B, TA, DA)
    ref_act = flow_sample_reference(
        z, state, params, inference_steps=n_steps, act_range=(-1.0, 1.0),
        clip_intermediate_actions=False, weight_dtype=jnp.bfloat16)
    assert jnp.allclose(act, ref_act, atol=5e-3, rtol=5e-3), \
        "fused sampler mismatch vs matched (bf16-weight) JAX reference"

    # single-step edge case (guarded linspace denominator)
    act1 = jax.block_until_ready(flow_mlp_sample(
        z, state, params, inference_steps=1,
        act_range=(-1.0, 1.0), clip_intermediate_actions=False))
    ref_act1 = flow_sample_reference(
        z, state, params, inference_steps=1, act_range=(-1.0, 1.0),
        clip_intermediate_actions=False, weight_dtype=jnp.bfloat16)
    assert jnp.allclose(act1, ref_act1, atol=5e-3, rtol=5e-3), \
        "single-step sampler mismatch"

    print("KERNEL_OK")
</pallas_src>

<mosaic_0001>
module attributes {stable_mosaic.version = 11 : i64} {
  func.func @flow_mlp_fwd_kernel(%arg0: memref<2x1xf32, #tpu.memory_space<vmem>>, %arg1: memref<2x32xf32, #tpu.memory_space<vmem>>, %arg2: memref<2x16xf32, #tpu.memory_space<vmem>>, %arg3: memref<8x32xbf16, #tpu.memory_space<vmem>>, %arg4: memref<8x32xbf16, #tpu.memory_space<vmem>>, %arg5: memref<1x32xf32, #tpu.memory_space<vmem>>, %arg6: memref<32x16xbf16, #tpu.memory_space<vmem>>, %arg7: memref<1x16xf32, #tpu.memory_space<vmem>>, %arg8: memref<32x256xbf16, #tpu.memory_space<vmem>>, %arg9: memref<16x256xbf16, #tpu.memory_space<vmem>>, %arg10: memref<16x256xbf16, #tpu.memory_space<vmem>>, %arg11: memref<1x256xf32, #tpu.memory_space<vmem>>, %arg12: memref<256x256xbf16, #tpu.memory_space<vmem>>, %arg13: memref<1x256xf32, #tpu.memory_space<vmem>>, %arg14: memref<256x32xbf16, #tpu.memory_space<vmem>>, %arg15: memref<1x32xf32, #tpu.memory_space<vmem>>, %arg16: memref<2x32xf32, #tpu.memory_space<vmem>>) attributes {dimension_semantics = [], scalar_prefetch = 0 : i64, scratch_operands = 0 : i64, tpu.core_type = #tpu.core_type<tc>} {
    %c0 = arith.constant 0 : index
    %c0_0 = arith.constant 0 : index
    %0 = vector.load %arg0[%c0, %c0_0] : memref<2x1xf32, #tpu.memory_space<vmem>>, vector<2x1xf32>
    %c0_1 = arith.constant 0 : index
    %c0_2 = arith.constant 0 : index
    %1 = vector.load %arg3[%c0_1, %c0_2] : memref<8x32xbf16, #tpu.memory_space<vmem>>, vector<8x32xbf16>
    %c0_3 = arith.constant 0 : index
    %c0_4 = arith.constant 0 : index
    %2 = vector.load %arg4[%c0_3, %c0_4] : memref<8x32xbf16, #tpu.memory_space<vmem>>, vector<8x32xbf16>
    %c0_5 = arith.constant 0 : index
    %c0_6 = arith.constant 0 : index
    %3 = vector.load %arg5[%c0_5, %c0_6] : memref<1x32xf32, #tpu.memory_space<vmem>>, vector<1x32xf32>
    %c0_7 = arith.constant 0 : index
    %c0_8 = arith.constant 0 : index
    %4 = vector.load %arg6[%c0_7, %c0_8] : memref<32x16xbf16, #tpu.memory_space<vmem>>, vector<32x16xbf16>
    %c0_9 = arith.constant 0 : index
    %c0_10 = arith.constant 0 : index
    %5 = vector.load %arg7[%c0_9, %c0_10] : memref<1x16xf32, #tpu.memory_space<vmem>>, vector<1x16xf32>
    %6 = tpu.iota {dimensions = array<i32: 1>} : vector<2x8xi32>
    %7 = arith.sitofp %6 : vector<2x8xi32> to vector<2x8xf32>
    %cst = arith.constant -1.31576288 : f32
    %8 = vector.broadcast %cst : f32 to vector<2x8xf32>
    %9 = arith.mulf %7, %8 : vector<2x8xf32>
    %10 = math.exp %9 : vector<2x8xf32>
    %11 = vector.broadcast %0 : vector<2x1xf32> to vector<2x8xf32>
    %12 = arith.mulf %11, %10 : vector<2x8xf32>
    %13 = math.sin %12 : vector<2x8xf32>
    %14 = arith.truncf %13 : vector<2x8xf32> to vector<2x8xbf16>
    %cst_11 = arith.constant dense<0.000000e+00> : vector<2x32xf32>
    %15 = tpu.matmul %14, %1, %cst_11 {dimension_numbers = #tpu.dot_dimension_numbers<[1], [0], [0], [1], [0, 0, 1, 1], [], []>} : vector<2x8xbf16>, vector<8x32xbf16>, vector<2x32xf32> -> vector<2x32xf32>
    %16 = math.cos %12 : vector<2x8xf32>
    %17 = arith.truncf %16 : vector<2x8xf32> to vector<2x8xbf16>
    %cst_12 = arith.constant dense<0.000000e+00> : vector<2x32xf32>
    %18 = tpu.matmul %17, %2, %cst_12 {dimension_numbers = #tpu.dot_dimension_numbers<[1], [0], [0], [1], [0, 0, 1, 1], [], []>} : vector<2x8xbf16>, vector<8x32xbf16>, vector<2x32xf32> -> vector<2x32xf32>
    %19 = arith.addf %15, %18 : vector<2x32xf32>
    %20 = vector.broadcast %3 : vector<1x32xf32> to vector<2x32xf32>
    %21 = arith.addf %19, %20 : vector<2x32xf32>
    %cst_13 = arith.constant 2.000000e+01 : f32
    %22 = vector.broadcast %cst_13 : f32 to vector<2x32xf32>
    %23 = arith.minimumf %21, %22 : vector<2x32xf32>
    %24 = math.exp %23 : vector<2x32xf32>
    %cst_14 = arith.constant 1.000000e+00 : f32
    %25 = vector.broadcast %cst_14 : f32 to vector<2x32xf32>
    %26 = arith.addf %25, %24 : vector<2x32xf32>
    %cst_15 = arith.constant 1.000000e+00 : f32
    %27 = vector.broadcast %cst_15 : f32 to vector<2x32xf32>
    %28 = arith.addf %27, %24 : vector<2x32xf32>
    %29 = arith.mulf %26, %28 : vector<2x32xf32>
    %cst_16 = arith.constant 1.000000e+00 : f32
    %30 = vector.broadcast %cst_16 : f32 to vector<2x32xf32>
    %31 = arith.subf %29, %30 : vector<2x32xf32>
    %32 = arith.mulf %21, %31 : vector<2x32xf32>
    %cst_17 = arith.constant 1.000000e+00 : f32
    %33 = vector.broadcast %cst_17 : f32 to vector<2x32xf32>
    %34 = arith.addf %29, %33 : vector<2x32xf32>
    %35 = tpu.reciprocal %34 {approx = true} : vector<2x32xf32> -> vector<2x32xf32>
    %36 = arith.mulf %32, %35 : vector<2x32xf32>
    %cst_18 = arith.constant 2.000000e+01 : f32
    %37 = vector.broadcast %cst_18 : f32 to vector<2x32xf32>
    %38 = arith.cmpf ogt, %21, %37 : vector<2x32xf32>
    %39 = arith.select %38, %21, %36 : vector<2x32xi1>, vector<2x32xf32>
    %40 = arith.truncf %39 : vector<2x32xf32> to vector<2x32xbf16>
    %cst_19 = arith.constant dense<0.000000e+00> : vector<2x16xf32>
    %41 = tpu.matmul %40, %4, %cst_19 {dimension_numbers = #tpu.dot_dimension_numbers<[1], [0], [0], [1], [0, 0, 1, 1], [], []>} : vector<2x32xbf16>, vector<32x16xbf16>, vector<2x16xf32> -> vector<2x16xf32>
    %42 = vector.broadcast %5 : vector<1x16xf32> to vector<2x16xf32>
    %43 = arith.addf %41, %42 : vector<2x16xf32>
    %c0_20 = arith.constant 0 : index
    %c0_21 = arith.constant 0 : index
    %44 = vector.load %arg1[%c0_20, %c0_21] : memref<2x32xf32, #tpu.memory_space<vmem>>, vector<2x32xf32>
    %c0_22 = arith.constant 0 : index
    %c0_23 = arith.constant 0 : index
    %45 = vector.load %arg8[%c0_22, %c0_23] : memref<32x256xbf16, #tpu.memory_space<vmem>>, vector<32x256xbf16>
    %46 = arith.truncf %44 : vector<2x32xf32> to vector<2x32xbf16>
    %cst_24 = arith.constant dense<0.000000e+00> : vector<2x256xf32>
    %47 = tpu.matmul %46, %45, %cst_24 {dimension_numbers = #tpu.dot_dimension_numbers<[1], [0], [0], [1], [0, 0, 1, 1], [], []>} : vector<2x32xbf16>, vector<32x256xbf16>, vector<2x256xf32> -> vector<2x256xf32>
    %c0_25 = arith.constant 0 : index
    %c0_26 = arith.constant 0 : index
    %48 = vector.load %arg9[%c0_25, %c0_26] : memref<16x256xbf16, #tpu.memory_space<vmem>>, vector<16x256xbf16>
    %49 = arith.truncf %43 : vector<2x16xf32> to vector<2x16xbf16>
    %cst_27 = arith.constant dense<0.000000e+00> : vector<2x256xf32>
    %50 = tpu.matmul %49, %48, %cst_27 {dimension_numbers = #tpu.dot_dimension_numbers<[1], [0], [0], [1], [0, 0, 1, 1], [], []>} : vector<2x16xbf16>, vector<16x256xbf16>, vector<2x256xf32> -> vector<2x256xf32>
    %51 = arith.addf %47, %50 : vector<2x256xf32>
    %c0_28 = arith.constant 0 : index
    %c0_29 = arith.constant 0 : index
    %52 = vector.load %arg2[%c0_28, %c0_29] : memref<2x16xf32, #tpu.memory_space<vmem>>, vector<2x16xf32>
    %c0_30 = arith.constant 0 : index
    %c0_31 = arith.constant 0 : index
    %53 = vector.load %arg10[%c0_30, %c0_31] : memref<16x256xbf16, #tpu.memory_space<vmem>>, vector<16x256xbf16>
    %54 = arith.truncf %52 : vector<2x16xf32> to vector<2x16xbf16>
    %cst_32 = arith.constant dense<0.000000e+00> : vector<2x256xf32>
    %55 = tpu.matmul %54, %53, %cst_32 {dimension_numbers = #tpu.dot_dimension_numbers<[1], [0], [0], [1], [0, 0, 1, 1], [], []>} : vector<2x16xbf16>, vector<16x256xbf16>, vector<2x256xf32> -> vector<2x256xf32>
    %56 = arith.addf %51, %55 : vector<2x256xf32>
    %c0_33 = arith.constant 0 : index
    %c0_34 = arith.constant 0 : index
    %57 = vector.load %arg11[%c0_33, %c0_34] : memref<1x256xf32, #tpu.memory_space<vmem>>, vector<1x256xf32>
    %58 = vector.broadcast %57 : vector<1x256xf32> to vector<2x256xf32>
    %59 = arith.addf %56, %58 : vector<2x256xf32>
    %cst_35 = arith.constant 2.000000e+01 : f32
    %60 = vector.broadcast %cst_35 : f32 to vector<2x256xf32>
    %61 = arith.minimumf %59, %60 : vector<2x256xf32>
    %62 = math.exp %61 : vector<2x256xf32>
    %cst_36 = arith.constant 1.000000e+00 : f32
    %63 = vector.broadcast %cst_36 : f32 to vector<2x256xf32>
    %64 = arith.addf %63, %62 : vector<2x256xf32>
    %cst_37 = arith.constant 1.000000e+00 : f32
    %65 = vector.broadcast %cst_37 : f32 to vector<2x256xf32>
    %66 = arith.addf %65, %62 : vector<2x256xf32>
    %67 = arith.mulf %64, %66 : vector<2x256xf32>
    %cst_38 = arith.constant 1.000000e+00 : f32
    %68 = vector.broadcast %cst_38 : f32 to vector<2x256xf32>
    %69 = arith.subf %67, %68 : vector<2x256xf32>
    %70 = arith.mulf %59, %69 : vector<2x256xf32>
    %cst_39 = arith.constant 1.000000e+00 : f32
    %71 = vector.broadcast %cst_39 : f32 to vector<2x256xf32>
    %72 = arith.addf %67, %71 : vector<2x256xf32>
    %73 = tpu.reciprocal %72 {approx = true} : vector<2x256xf32> -> vector<2x256xf32>
    %74 = arith.mulf %70, %73 : vector<2x256xf32>
    %cst_40 = arith.constant 2.000000e+01 : f32
    %75 = vector.broadcast %cst_40 : f32 to vector<2x256xf32>
    %76 = arith.cmpf ogt, %59, %75 : vector<2x256xf32>
    %77 = arith.select %76, %59, %74 : vector<2x256xi1>, vector<2x256xf32>
    %c0_41 = arith.constant 0 : index
    %c0_42 = arith.constant 0 : index
    %78 = vector.load %arg12[%c0_41, %c0_42] : memref<256x256xbf16, #tpu.memory_space<vmem>>, vector<256x256xbf16>
    %79 = arith.truncf %77 : vector<2x256xf32> to vector<2x256xbf16>
    %cst_43 = arith.constant dense<0.000000e+00> : vector<2x256xf32>
    %80 = tpu.matmul %79, %78, %cst_43 {dimension_numbers = #tpu.dot_dimension_numbers<[1], [0], [0], [1], [0, 0, 1, 1], [], []>} : vector<2x256xbf16>, vector<256x256xbf16>, vector<2x256xf32> -> vector<2x256xf32>
    %c0_44 = arith.constant 0 : index
    %c0_45 = arith.constant 0 : index
    %81 = vector.load %arg13[%c0_44, %c0_45] : memref<1x256xf32, #tpu.memory_space<vmem>>, vector<1x256xf32>
    %82 = vector.broadcast %81 : vector<1x256xf32> to vector<2x256xf32>
    %83 = arith.addf %80, %82 : vector<2x256xf32>
    %cst_46 = arith.constant 2.000000e+01 : f32
    %84 = vector.broadcast %cst_46 : f32 to vector<2x256xf32>
    %85 = arith.minimumf %83, %84 : vector<2x256xf32>
    %86 = math.exp %85 : vector<2x256xf32>
    %cst_47 = arith.constant 1.000000e+00 : f32
    %87 = vector.broadcast %cst_47 : f32 to vector<2x256xf32>
    %88 = arith.addf %87, %86 : vector<2x256xf32>
    %cst_48 = arith.constant 1.000000e+00 : f32
    %89 = vector.broadcast %cst_48 : f32 to vector<2x256xf32>
    %90 = arith.addf %89, %86 : vector<2x256xf32>
    %91 = arith.mulf %88, %90 : vector<2x256xf32>
    %cst_49 = arith.constant 1.000000e+00 : f32
    %92 = vector.broadcast %cst_49 : f32 to vector<2x256xf32>
    %93 = arith.subf %91, %92 : vector<2x256xf32>
    %94 = arith.mulf %83, %93 : vector<2x256xf32>
    %cst_50 = arith.constant 1.000000e+00 : f32
    %95 = vector.broadcast %cst_50 : f32 to vector<2x256xf32>
    %96 = arith.addf %91, %95 : vector<2x256xf32>
    %97 = tpu.reciprocal %96 {approx = true} : vector<2x256xf32> -> vector<2x256xf32>
    %98 = arith.mulf %94, %97 : vector<2x256xf32>
    %cst_51 = arith.constant 2.000000e+01 : f32
    %99 = vector.broadcast %cst_51 : f32 to vector<2x256xf32>
    %100 = arith.cmpf ogt, %83, %99 : vector<2x256xf32>
    %101 = arith.select %100, %83, %98 : vector<2x256xi1>, vector<2x256xf32>
    %c0_52 = arith.constant 0 : index
    %c0_53 = arith.constant 0 : index
    %102 = vector.load %arg14[%c0_52, %c0_53] : memref<256x32xbf16, #tpu.memory_space<vmem>>, vector<256x32xbf16>
    %103 = arith.truncf %101 : vector<2x256xf32> to vector<2x256xbf16>
    %cst_54 = arith.constant dense<0.000000e+00> : vector<2x32xf32>
    %104 = tpu.matmul %103, %102, %cst_54 {dimension_numbers = #tpu.dot_dimension_numbers<[1], [0], [0], [1], [0, 0, 1, 1], [], []>} : vector<2x256xbf16>, vector<256x32xbf16>, vector<2x32xf32> -> vector<2x32xf32>
    %c0_55 = arith.constant 0 : index
    %c0_56 = arith.constant 0 : index
    %105 = vector.load %arg15[%c0_55, %c0_56] : memref<1x32xf32, #tpu.memory_space<vmem>>, vector<1x32xf32>
    %106 = vector.broadcast %105 : vector<1x32xf32> to vector<2x32xf32>
    %107 = arith.addf %104, %106 : vector<2x32xf32>
    %c0_57 = arith.constant 0 : index
    %c0_58 = arith.constant 0 : index
    %108 = vector.load %arg16[%c0_57, %c0_58] : memref<2x32xf32, #tpu.memory_space<vmem>>, vector<2x32xf32>
    tpu.vector_store %arg16[%c0_57, %c0_58], %107 {strides = array<i32>} : memref<2x32xf32, #tpu.memory_space<vmem>>, vector<2x32xf32>,
    return
  }
}

</mosaic_0001>

<bundles_post_ra>
// kernel: flow_mlp_forward.1
= control target key start
LH: loop header
LB: loop body
LE: loop exit
PB: predicated region body
PF: predicated region fallthrough
CT: control target
= control target key end

     0   :  { %v1387_v0 = vmov 0   ;;  %vm288_vm0 = vcmask 1043456   ;;  %v1388_v2 = vmov 0.0   ;;  %vm1389_vm1 = vmmov 0   ;;  %s1741_s0 = inlined_call_operand.vmem [shape: f32[2,1], index: 0, kind: input, shape index: {}]   ;;  %s1742_s4 = inlined_call_operand.vmem [shape: bf16[8,32], index: 4, kind: input, shape index: {}]   ;;  %s1743_s3 = inlined_call_operand.vmem [shape: bf16[8,32], index: 3, kind: input, shape index: {}]   ;;  %s1744_s6 = inlined_call_operand.vmem [shape: bf16[32,16], index: 6, kind: input, shape index: {}]   ;;  %s1745_s9 = inlined_call_operand.vmem [shape: bf16[16,256], index: 9, kind: input, shape index: {}]   ;;  %s1746_s5 = inlined_call_operand.vmem [shape: f32[1,32], index: 5, kind: input, shape index: {}]   ;;  %s1747_s8 = inlined_call_operand.vmem [shape: bf16[32,256], index: 8, kind: input, shape index: {}]   ;;  %s1748_s10 = inlined_call_operand.vmem [shape: bf16[16,256], index: 10, kind: input, shape index: {}]   ;;  %s1749_s12 = inlined_call_operand.vmem [shape: bf16[256,256], index: 12, kind: input, shape index: {}]   ;;  %s1750_s7 = inlined_call_operand.vmem [shape: f32[1,16], index: 7, kind: input, shape index: {}]   ;;  %s1751_s1 = inlined_call_operand.vmem [shape: f32[2,32], index: 1, kind: input, shape index: {}]   ;;  %s1752_s2 = inlined_call_operand.vmem [shape: f32[2,16], index: 2, kind: input, shape index: {}]   ;;  %s1753_s11 = inlined_call_operand.vmem [shape: f32[1,256], index: 11, kind: input, shape index: {}]   ;;  %s1754_s14 = inlined_call_operand.vmem [shape: bf16[256,32], index: 14, kind: input, shape index: {}]   ;;  %s1755_s13 = inlined_call_operand.vmem [shape: f32[1,256], index: 13, kind: input, shape index: {}]   ;;  %s1756_s15 = inlined_call_operand.vmem [shape: f32[1,32], index: 15, kind: input, shape index: {}]   ;;  %s1757_s16 = inlined_call_operand.vmem [shape: f32[2,32], index: 16, kind: output, shape index: {}]  }
   0x1   :  { %1758 = sst [smem:[#allocation2_spill]] %s1741_s0  ;;  %1282 = vset.pattern.permute.xlu0 %v1387_v0  ;;  %1249 = vmatprep.subr.bf16.mxu0 %v1388_v2  ;;  %v56_v3 = vld [vmem:[%s1742_s4] sm:$0xf]  ;;  %v63_v7 = vlaneseq  ;;  %v1390_v25 = vmov 683565275  }
   0x2   :  { %s1759_s23 = sld [smem:[#allocation2_spill]]  ;;  %1255 = vmatprep.subr.bf16.mxu1 %v1388_v2  ;;  %v55_v4 = vld [vmem:[%s1743_s3] sm:$0xf]  ;;  %v290_v5 = vsel %vm288_vm0, %v56_v3, 0  ;;  %1251 = vmatprep.mubr.msk.bf16.mxu0 %vm1389_vm1, %v1388_v2  ;;  %v1391_v27 = vmov 2475754826  }
   0x3   :  { %v336_v6 = vsel %vm288_vm0, %v55_v4, 0  ;;  %1257 = vmatprep.mubr.msk.bf16.mxu1 %vm1389_vm1, %v1388_v2  ;;  %1250 = vmatpush3.bf16.msra.mxu0 %v290_v5  ;;  %v64_v8 = vand.u32 127, %v63_v7  ;;  %v1392_v30 = vmov 2131351028   ;;  %v1393_v33 = vmov 2102212464  }
   0x4   :  { %1256 = vmatpush3.bf16.msra.mxu1 %v336_v6  ;;  %v1394_v36 = vmov 920167782   ;;  %v1395_v39 = vmov 1326507024  }
   0x5   :  { %1261 = vmatprep.subr.bf16.mxu1 %v1388_v2  ;;  %v65_v9 = vcvt.s32.f32 %v64_v8 }
   0x7   :  { %v66_v10 = vmul.f32 -1.3157629, %v65_v9 }
   0x8   :  { %v54_v1 = vld [vmem:[%s1759_s23] sm:$0x3] }
   0x9   :  { %71 = vperm.xlu0 %1282, %v54_v1   ;;  %v67_v11 = vmul.f32 1.442695, %v66_v10 }
   0xb   :  { %1361 = vpow2.f32 %v67_v11 }
  0x15   :  { %v1362_v12 = vpop.eup %1361 }
  0x88   :  { %v72_v13 = vpop.permute.xlu0 %71 }
  0x89   :  { %v1499_v14 = vmul.f32 %v1362_v12, %v72_v13 }
  0x8b   :  { %v78_v15 = vand.u32 2139095040, %v1499_v14  ;;  %v75_v19 = vand.u32 2147483647, %v1499_v14  ;;  %vm77_vm9 = vcmp.lt.s32.totalorder %v1499_v14, 0 }
  0x8d   :  { %v79_v16 = vshrl.u32 %v78_v15, 23  ;;  %v82_v22 = vand.u32 8388607, %v75_v19  ;;  %vm76_vm10 = vcmp.le.f32.partialorder %v75_v19, 0.7853982 }
  0x8f   :  { %v1140_v17 = vadd.s32 4294967169, %v79_v16  ;;  %v83_v41 = vor.u32 8388608, %v82_v22 }
  0x91   :  { %v85_v18 = vadd.s32 1, %v1140_v17  ;;  %v123_v55 = vshll.u32 %v83_v41, 8 }
  0x93   :  { %vm86_vm2 = vcmp.gt.s32.totalorder %v85_v18, 0 }
  0x94   :  { %v87_v20 = vsel %vm86_vm2, %v85_v18, 0  ;;  %vm167_vm2 = vweird.f32 %v1499_v14 }
  0x95   :  { %v89_v21 = vand.u32 31, %v87_v20  ;;  %v88_v24 = vshrl.u32 %v87_v20, 5 }
  0x97   :  { %v90_v23 = vsub.s32 32, %v89_v21  ;;  %v92_v26 = vshll.u32 %v1390_v25, %v89_v21  ;;  %v95_v28 = vshll.u32 %v1391_v27, %v89_v21  ;;  %v98_v32 = vshll.u32 %v1392_v30, %v89_v21 }
  0x98   :  { %v101_v35 = vshll.u32 %v1393_v33, %v89_v21  ;;  %v104_v38 = vshll.u32 %v1394_v36, %v89_v21  ;;  %vm107_vm3 = vcmp.lt.s32.totalorder %v88_v24, 1  ;;  %vm110_vm4 = vcmp.lt.s32.totalorder %v88_v24, 4 }
  0x99   :  { %v93_v29 = vshrl.u32 %v1391_v27, %v90_v23  ;;  %v96_v31 = vshrl.u32 %v1392_v30, %v90_v23  ;;  %v99_v34 = vshrl.u32 %v1393_v33, %v90_v23  ;;  %v102_v37 = vshrl.u32 %v1394_v36, %v90_v23 }
  0x9a   :  { %v105_v40 = vshrl.u32 %v1395_v39, %v90_v23  ;;  %v91_v50 = vshrl.u32 %v1390_v25, %v90_v23  ;;  %vm109_vm5 = vcmp.lt.s32.totalorder %v88_v24, 3  ;;  %vm108_vm6 = vcmp.lt.s32.totalorder %v88_v24, 2 }
  0x9b   :  { %v94_v42 = vor.u32 %v93_v29, %v92_v26  ;;  %v97_v43 = vor.u32 %v96_v31, %v95_v28  ;;  %v100_v44 = vor.u32 %v99_v34, %v98_v32  ;;  %v103_v45 = vor.u32 %v102_v37, %v101_v35 }
  0x9c   :  { %v106_v46 = vor.u32 %v105_v40, %v104_v38 }
  0x9d   :  { %v112_v47 = vsel %vm110_vm4, %v100_v44, 2102212464  ;;  %v115_v48 = vsel %vm107_vm3, %v94_v42, %v97_v43  ;;  %v119_v49 = vsel %vm107_vm3, %v97_v43, %v100_v44  ;;  %v116_v51 = vsel %vm110_vm4, %v103_v45, 920167782 }
  0x9e   :  { %v120_v52 = vsel %vm110_vm4, %v106_v46, 1326507024  ;;  %v117_v53 = vsel %vm109_vm5, %v100_v44, %v116_v51  ;;  %v111_v56 = vsel %vm107_vm3, %v91_v50, %v94_v42  ;;  %v113_v57 = vsel %vm109_vm5, %v97_v43, %v112_v47 }
  0x9f   :  { %v121_v54 = vsel %vm109_vm5, %v103_v45, %v120_v52  ;;  %v118_v58 = vsel %vm108_vm6, %v115_v48, %v117_v53  ;;  %v114_v1 = vsel %vm108_vm6, %v111_v56, %v113_v57  ;;  %vm284_vm3 = vcmask 64512   ;;  %v1283_v53 = vld [vmem:[%s1744_s6] sm:$0xff]  }
  0xa0   :  { %v122_v59 = vsel %vm108_vm6, %v119_v49, %v121_v54  ;;  %v1508_v62 = vmul.u32.u64.low %v123_v55, %v118_v58  ;;  %v1509_v63 = vmul.u32.u64.high %v123_v55, %v118_v58, %v1508_v62  ;;  %v130_v4 = vmul.u32 %v123_v55, %v114_v1  ;;  %v1287_v54 = vld [vmem:[%s1745_s9 + $0x4] ss:$8 sps:$4 sm:$0xff]   ;;  %v1150_v56 = vld [vmem:[%s1746_s5] ss:$0 sm:$0xff] }
  0xa1   :  { %v1505_v60 = vmul.u32.u64.low %v123_v55, %v122_v59  ;;  %v1506_v61 = vmul.u32.u64.high %v123_v55, %v122_v59, %v1505_v60  ;;  %vm416_vm4 = vcmask 261120   ;;  %vm479_vm5 = vcmask 130048  }
  0xa2   :  { %v133_v3 = vadd.s32 1, %v1509_v63 }
  0xa3   :  { %vm132_vm7 = vc.u32 %v1506_v61, %v1508_v62  ;;  %v131_v18 = vadd.s32 %v1508_v62, %v1506_v61 }
  0xa4   :  { %v134_v5 = vsel %vm132_vm7, %v133_v3, %v1509_v63 }
  0xa5   :  { %v135_v6 = vadd.s32 %v134_v5, %v130_v4 }
  0xa7   :  { %v136_v8 = vadd.s32 536870912, %v135_v6 }
  0xa9   :  { %v137_v9 = vshrl.u32 %v136_v8, 30 }
  0xab   :  { %v138_v10 = vshll.u32 %v137_v9, 30  ;;  %v161_v31 = vsub.s32 4, %v137_v9 }
  0xad   :  { %v139_v11 = vsub.s32 %v135_v6, %v138_v10  ;;  %v162_v34 = vsel %vm77_vm9, %v161_v31, %v137_v9  ;;  %v1291_v31 = vld [vmem:[%s1747_s8 + $0x10] ss:$8 sps:$4 sm:$0xff]  }
  0xae   :  { %v164_v36 = vsel %vm76_vm10, 0, %v162_v34 }
  0xaf   :  { %v141_v12 = vsub.s32 0, %v139_v11  ;;  %v168_v37 = vadd.s32 3, %v164_v36  ;;  %v273_v38 = vand.u32 3, %v164_v36  ;;  %v588_v36 = vld [vmem:[%s1752_s2] sm:$0x3] }
  0xb1   :  { %v1141_v13 = vmin.u32 %v141_v12, %v139_v11  ;;  %v169_v39 = vand.u32 3, %v168_v37  ;;  %vm278_vm11 = vcmp.eq.s32.totalorder %v273_v38, 2  ;;  %vm275_vm13 = vcmp.eq.s32.totalorder %v273_v38, 0 }
  0xb2   :  { %vm274_vm15 = vcmp.lt.s32.totalorder %v273_v38, 2  ;;  %v591_v37 = vpack.c.bf16 %v588_v36, %v588_v36  ;;  %v1302_v38 = vld [vmem:[%s1749_s12 + $0x14] ss:$8 sps:$4 sm:$0xff]  }
  0xb3   :  { %v143_v15 = vclz %v1141_v13  ;;  %vm174_vm12 = vcmp.eq.s32.totalorder %v169_v39, 2  ;;  %vm171_vm14 = vcmp.eq.s32.totalorder %v169_v39, 0  ;;  %vm170_vm0 = vcmp.lt.s32.totalorder %v169_v39, 2  ;;  %v1300_v39 = vld [vmem:[%s1749_s12 + $0x10] ss:$8 sps:$4 sm:$0xff]  }
  0xb5   :  { %v1142_v16 = vadd.s32 4294967294, %v143_v15 }
  0xb7   :  { %vm1143_vm8 = vcmp.lt.s32.totalorder %v1142_v16, 0 }
  0xb8   :  { %v146_v17 = vsel %vm1143_vm8, 0, %v1142_v16  ;;  %v1285_v16 = vld [vmem:[%s1745_s9] ss:$8 sps:$4 sm:$0xff]  }
  0xb9   :  { %v147_v20 = vsub.s32 32, %v146_v17  ;;  %v151_v21 = vsub.s32 4294967266, %v146_v17  ;;  %v148_v22 = vshll.u32 %v139_v11, %v146_v17 }
  0xbb   :  { %v149_v23 = vshrl.u32 %v131_v18, %v147_v20  ;;  %v152_v24 = vadd.s32 127, %v151_v21  ;;  %v1290_v18 = vld [vmem:[%s1747_s8 + $0x4] ss:$8 sps:$4 sm:$0xff]   ;;  %v1297_v20 = vld [vmem:[%s1749_s12] ss:$8 sps:$4 sm:$0xff]  }
  0xbc   :  { %v1299_v21 = vld [vmem:[%s1749_s12 + $0x4] ss:$8 sps:$4 sm:$0xff]  }
  0xbd   :  { %v150_v25 = vor.u32 %v149_v23, %v148_v22  ;;  %v153_v26 = vshll.u32 %v152_v24, 23  ;;  %892 = vmatprep.subr.bf16.mxu0 %v1299_v21  ;;  %v1152_v22 = vld [vmem:[%s1750_s7] ss:$0 sm:$0xff] }
  0xbf   :  { %v154_v27 = vor.u32 4788187, %v153_v26  ;;  %v157_v29 = vcvt.s32.f32 %v150_v25 }
  0xc1   :  { %v155_v28 = vand.u32 2147483647, %v154_v27  ;;  %v1288_v27 = vld [vmem:[%s1747_s8] ss:$8 sps:$4 sm:$0xff]  }
  0xc3   :  { %v158_v30 = vmul.f32 %v157_v29, %v155_v28 }
  0xc5   :  { %v159_v32 = vxor.u32 2147483648, %v158_v30 }
  0xc7   :  { %v160_v33 = vsel %vm77_vm9, %v159_v32, %v158_v30  ;;  %v1293_v30 = vld [vmem:[%s1747_s8 + $0x14] ss:$8 sps:$4 sm:$0xff]   ;;  %v460_v32 = vld [vmem:[%s1751_s1] sm:$0x3] }
  0xc8   :  { %v163_v35 = vsel %vm76_vm10, %v1499_v14, %v160_v33  ;;  %v1284_v14 = vld [vmem:[%s1744_s6 + $0x8] sm:$0xff]   ;;  %v465_v34 = vpack.c.bf16 %v460_v32, %v460_v32  ;;  %vm1134_vm10 = vcmask 254976  }
  0xc9   :  { %1363 = vcosq.f32 %v163_v35  ;;  %v1296_v33 = vld [vmem:[%s1748_s10 + $0x4] ss:$8 sps:$4 sm:$0xff]  }
  0xca   :  { %1365 = vsinq.f32 %v163_v35  ;;  %v1294_v35 = vld [vmem:[%s1748_s10] ss:$8 sps:$4 sm:$0xff]  }
  0xd3   :  { %v1364_v40 = vpop.eup %1363 }
  0xd4   :  { %v1366_v41 = vpop.eup %1365  ;;  %v175_v42 = vxor.u32 2147483648, %v1364_v40 }
  0xd5   :  { %v172_v43 = vxor.u32 2147483648, %v1366_v41 }
  0xd6   :  { %v280_v44 = vsel %vm278_vm11, %v175_v42, %v1366_v41  ;;  %v176_v19 = vsel %vm174_vm12, %v175_v42, %v1366_v41  ;;  %v1308_v41 = vld [vmem:[%s1749_s12 + $0x34] ss:$8 sps:$4 sm:$0xff]   ;;  %v1306_v42 = vld [vmem:[%s1749_s12 + $0x30] ss:$8 sps:$4 sm:$0xff]  }
  0xd7   :  { %v277_v45 = vsel %vm275_vm13, %v1364_v40, %v172_v43  ;;  %v173_v46 = vsel %vm171_vm14, %v1364_v40, %v172_v43  ;;  %v1305_v40 = vld [vmem:[%s1749_s12 + $0x24] ss:$8 sps:$4 sm:$0xff]   ;;  %v1309_v43 = vld [vmem:[%s1749_s12 + $0x40] ss:$8 sps:$4 sm:$0xff]  }
  0xd8   :  { %v281_v47 = vsel %vm274_vm15, %v277_v45, %v280_v44  ;;  %v177_v48 = vsel %vm170_vm0, %v173_v46, %v176_v19  ;;  %v1311_v44 = vld [vmem:[%s1749_s12 + $0x44] ss:$8 sps:$4 sm:$0xff]   ;;  %v1314_v19 = vld [vmem:[%s1749_s12 + $0x54] ss:$8 sps:$4 sm:$0xff]   ;;  %v1312_v45 = vld [vmem:[%s1749_s12 + $0x50] ss:$8 sps:$4 sm:$0xff]  }
  0xd9   :  { %v282_v49 = vsel %vm167_vm2, nan, %v281_v47  ;;  %v178_v50 = vsel %vm167_vm2, nan, %v177_v48  ;;  %v1317_v46 = vld [vmem:[%s1749_s12 + $0x64] ss:$8 sps:$4 sm:$0xff]   ;;  %v1315_v47 = vld [vmem:[%s1749_s12 + $0x60] ss:$8 sps:$4 sm:$0xff]  }
  0xda   :  { %v283_v51 = vpack.c.bf16 %v282_v49, %v282_v49  ;;  %v179_v52 = vpack.c.bf16 %v178_v50, %v178_v50  ;;  %v1320_v48 = vld [vmem:[%s1749_s12 + $0x74] ss:$8 sps:$4 sm:$0xff]   ;;  %v1318_v49 = vld [vmem:[%s1749_s12 + $0x70] ss:$8 sps:$4 sm:$0xff]   ;;  %v1323_v50 = vld [vmem:[%s1749_s12 + $0x84] ss:$8 sps:$4 sm:$0xff]  }
  0xdc   :  { %1252 = vmatmul.mubr.msk.bf16.vlgmr.msra.gmra.mrb[0].mxu0 %vm284_vm3, %v283_v51  ;;  %1258 = vmatmul.mubr.msk.bf16.vlgmr.msra.gmra.mrb[0].mxu1 %vm284_vm3, %v179_v52  ;;  %v1321_v51 = vld [vmem:[%s1749_s12 + $0x80] ss:$8 sps:$4 sm:$0xff]   ;;  %v1326_v52 = vld [vmem:[%s1749_s12 + $0x94] ss:$8 sps:$4 sm:$0xff]  }
  0xdd   :  { %1265 = vmatprep.mubr.msk.bf16.mxu1 %vm1389_vm1, %v1388_v2  ;;  %1262 = vmatpush3.bf16.msra.mxu1 %v1283_v53  ;;  %v1324_v53 = vld [vmem:[%s1749_s12 + $0x90] ss:$8 sps:$4 sm:$0xff]  }
  0xde   :  { %1263 = vmatprep.subr.bf16.mxu1 %v1388_v2  ;;  %893 = vmatpush1.bf16.msra.mxu0 %v1297_v20 }
  0xdf   :  { %894 = vmatprep.subr.bf16.mxu0 %v1302_v38 }
  0xe1   :  { %1264 = vmatpush3.bf16.msra.mxu1 %v1284_v14  ;;  %v1329_v14 = vld [vmem:[%s1749_s12 + $0xa4] ss:$8 sps:$4 sm:$0xff]  }
  0xe2   :  { %483 = vmatprep.subr.bf16.mxu1 %v1287_v54  ;;  %895 = vmatpush1.bf16.msra.mxu0 %v1300_v39  ;;  %v1327_v54 = vld [vmem:[%s1749_s12 + $0xa0] ss:$8 sps:$4 sm:$0xff]  }
  0xe3   :  { %896 = vmatprep.subr.bf16.mxu0 %v1305_v40 }
 0x1af   :  { %v326_v55 = vpop.f32.mrb[0].mxu0  ;;  %v372_v57 = vpop.f32.mrb[0].mxu1 }
 0x1b0   :  { %v373_v58 = vadd.f32 %v372_v57, %v326_v55  ;;  %v1253_v59 = vpop.f32.mrb[1].mxu0  ;;  %v1259_v60 = vpop.f32.mrb[1].mxu1  ;;  %v1332_v55 = vld [vmem:[%s1749_s12 + $0xb4] ss:$8 sps:$4 sm:$0xff]   ;;  %v1333_v57 = vld [vmem:[%s1749_s12 + $0xc0] ss:$8 sps:$4 sm:$0xff]  }
 0x1b1   :  { %v329_v2 = vpop.f32.mrb[2].mxu0  ;;  %v375_v61 = vpop.f32.mrb[2].mxu1  ;;  %v1338_v59 = vld [vmem:[%s1749_s12 + $0xd4] ss:$8 sps:$4 sm:$0xff]   ;;  %v1336_v60 = vld [vmem:[%s1749_s12 + $0xd0] ss:$8 sps:$4 sm:$0xff]  }
 0x1b2   :  { %v384_v62 = vadd.f32 %v1150_v56, %v373_v58  ;;  %v1254_v63 = vpop.f32.mrb[3].mxu0  ;;  %v1260_v1 = vpop.f32.mrb[3].mxu1  ;;  %v1330_v56 = vld [vmem:[%s1749_s12 + $0xb0] ss:$8 sps:$4 sm:$0xff]   ;;  %v1335_v58 = vld [vmem:[%s1749_s12 + $0xc4] ss:$8 sps:$4 sm:$0xff]  }
 0x1b3   :  { %v1341_v2 = vld [vmem:[%s1749_s12 + $0xe4] ss:$8 sps:$4 sm:$0xff]   ;;  %v1339_v61 = vld [vmem:[%s1749_s12 + $0xe0] ss:$8 sps:$4 sm:$0xff]   ;;  %v1342_v63 = vld [vmem:[%s1749_s12 + $0xf0] ss:$8 sps:$4 sm:$0xff]  }
 0x1b4   :  { %v385_v3 = vmin.f32 %v384_v62, 20.0  ;;  %vm395_vm1 = vcmp.gt.f32.partialorder %v384_v62, 20.0 }
 0x1b6   :  { %v386_v4 = vmul.f32 1.442695, %v385_v3 }
 0x1b8   :  { %1367 = vpow2.f32 %v386_v4 }
 0x1c2   :  { %v1368_v5 = vpop.eup %1367 }
 0x1c3   :  { %v388_v6 = vadd.f32 1.0, %v1368_v5 }
 0x1c5   :  { %v389_v8 = vmul.f32 %v388_v6, %v388_v6  ;;  %v1669_v6 = vshrl.u32 %v63_v7, 7 }
 0x1c7   :  { %v392_v9 = vadd.f32 1.0, %v389_v8  ;;  %v1151_v10 = vadd.f32 -1.0, %v389_v8 }
 0x1c9   :  { %1369 = vrcp.f32 %v392_v9  ;;  %v391_v11 = vmul.f32 %v1151_v10, %v384_v62 }
 0x1d3   :  { %v1370_v12 = vpop.eup %1369 }
 0x1d4   :  { %v394_v13 = vmul.f32 %v1370_v12, %v391_v11 }
 0x1d6   :  { %v396_v15 = vsel %vm395_vm1, %v384_v62, %v394_v13  ;;  %v1344_v62 = vld [vmem:[%s1749_s12 + $0xf4] ss:$8 sps:$4 sm:$0xff]  }
 0x1d7   :  { %v397_v17 = vpack.c.bf16 %v396_v15, %v396_v15  ;;  %v652_v15 = vsub.s32 0, %v1669_v6 }
 0x1d9   :  { %1266 = vmatmul.mubr.msk.bf16.vlgmr.msra.gmra.mrb[4].mxu1 %vm416_vm4, %v397_v17  ;;  %v656_v17 = vsub.s32 1, %v1669_v6 }
 0x1da   :  { %484 = vmatpush1.bf16.msra.mxu1 %v1285_v16  ;;  %515 = vmatprep.mubr.bf16.mxu1 %v1387_v0  ;;  %v648_v16 = vld [vmem:[%s1753_s11] sm:$0x3] }
 0x1db   :  { %547 = vmatprep.subr.bf16.mxu1 %v1290_v18  ;;  %v653_v18 = vrot.slane %v648_v16, %v652_v15  ;;  %v657_v7 = vrot.slane %v648_v16, %v656_v17 }
 0x2ac   :  { %v454_v23 = vpop.f32.mrb[4].mxu1 }
 0x2ad   :  { %v455_v24 = vadd.f32 %v1152_v22, %v454_v23  ;;  %v1267_v25 = vpop.f32.mrb[5].mxu1 }
 0x2ae   :  { %v457_v26 = vpop.f32.mrb[6].mxu1 }
 0x2af   :  { %v468_v28 = vpack.c.bf16 %v455_v24, %v455_v24  ;;  %v1268_v29 = vpop.f32.mrb[7].mxu1 }
 0x2b1   :  { %1158 = vmatmul.mubr.msk.bf16.vlgmr.msra.gmra.mrb[8].mxu1 %vm479_vm5, %v468_v28 }
 0x2b2   :  { %548 = vmatpush1.bf16.msra.mxu1 %v1288_v27  ;;  %579 = vmatprep.mubr.bf16.mxu1 %v1387_v0 }
 0x2b3   :  { %549 = vmatprep.subr.bf16.mxu1 %v1293_v30 }
 0x2b6   :  { %550 = vmatpush1.bf16.msra.mxu1 %v1291_v31 }
 0x2b7   :  { %605 = vmatprep.subr.bf16.mxu1 %v1296_v33 }
 0x2b9   :  { %1163 = vmatmul.mubr.msk.bf16.vlgmr.msra.gmra.mrb[12].mxu1 %vm416_vm4, %v465_v34 }
 0x2ba   :  { %606 = vmatpush1.bf16.msra.mxu1 %v1294_v35  ;;  %637 = vmatprep.mubr.bf16.mxu1 %v1387_v0  ;;  %v1303_v0 = vld [vmem:[%s1749_s12 + $0x20] ss:$8 sps:$4 sm:$0xff]  }
 0x2bb   :  { %897 = vmatpush1.bf16.msra.mxu0 %v1303_v0 }
 0x2bc   :  { %898 = vmatprep.subr.bf16.mxu0 %v1308_v41 }
 0x2bf   :  { %899 = vmatpush1.bf16.msra.mxu0 %v1306_v42 }
 0x2c0   :  { %900 = vmatprep.subr.bf16.mxu0 %v1311_v44 }
 0x2c1   :  { %1166 = vmatmul.mubr.msk.bf16.vlgmr.msra.gmra.mrb[16].mxu1 %vm479_vm5, %v591_v37 }
 0x2c3   :  { %901 = vmatpush1.bf16.msra.mxu0 %v1309_v43 }
 0x2c4   :  { %902 = vmatprep.subr.bf16.mxu0 %v1314_v19 }
 0x2c7   :  { %903 = vmatpush1.bf16.msra.mxu0 %v1312_v45 }
 0x2c8   :  { %904 = vmatprep.subr.bf16.mxu0 %v1317_v46 }
 0x2cb   :  { %905 = vmatpush1.bf16.msra.mxu0 %v1315_v47 }
 0x2cc   :  { %906 = vmatprep.subr.bf16.mxu0 %v1320_v48 }
 0x2cf   :  { %907 = vmatpush1.bf16.msra.mxu0 %v1318_v49 }
 0x2d0   :  { %908 = vmatprep.subr.bf16.mxu0 %v1323_v50  ;;  %v1345_v50 = vld [vmem:[%s1754_s14 + $0x40] sm:$0xff]  }
 0x2d1   :  { %1227 = vmatprep.subr.bf16.mxu1 %v1345_v50 }
 0x2d3   :  { %909 = vmatpush1.bf16.msra.mxu0 %v1321_v51  ;;  %v1346_v51 = vld [vmem:[%s1754_s14] sm:$0xff]  }
 0x2d4   :  { %910 = vmatprep.subr.bf16.mxu0 %v1326_v52  ;;  %1228 = vmatpush3.bf16.msra.mxu1 %v1346_v51  ;;  %v1347_v52 = vld [vmem:[%s1754_s14 + $0x48] sm:$0xff]  }
 0x2d5   :  { %1229 = vmatprep.subr.bf16.mxu1 %v1347_v52 }
 0x2d7   :  { %911 = vmatpush1.bf16.msra.mxu0 %v1324_v53  ;;  %v1348_v53 = vld [vmem:[%s1754_s14 + $0x8] sm:$0xff]  }
 0x2d8   :  { %912 = vmatprep.subr.bf16.mxu0 %v1329_v14  ;;  %1230 = vmatpush3.bf16.msra.mxu1 %v1348_v53  ;;  %v1349_v14 = vld [vmem:[%s1754_s14 + $0x50] sm:$0xff]  }
 0x2d9   :  { %1231 = vmatprep.subr.bf16.mxu1 %v1349_v14 }
 0x2db   :  { %913 = vmatpush1.bf16.msra.mxu0 %v1327_v54  ;;  %v1350_v54 = vld [vmem:[%s1754_s14 + $0x10] sm:$0xff]  }
 0x2dc   :  { %914 = vmatprep.subr.bf16.mxu0 %v1332_v55  ;;  %1232 = vmatpush3.bf16.msra.mxu1 %v1350_v54  ;;  %v1351_v55 = vld [vmem:[%s1754_s14 + $0x58] sm:$0xff]  }
 0x2dd   :  { %1233 = vmatprep.subr.bf16.mxu1 %v1351_v55 }
 0x2df   :  { %915 = vmatpush1.bf16.msra.mxu0 %v1330_v56  ;;  %v1352_v56 = vld [vmem:[%s1754_s14 + $0x18] sm:$0xff]  }
 0x2e0   :  { %916 = vmatprep.subr.bf16.mxu0 %v1335_v58  ;;  %1234 = vmatpush3.bf16.msra.mxu1 %v1352_v56  ;;  %v1354_v58 = vld [vmem:[%s1754_s14 + $0x20] sm:$0xff]  }
 0x2e3   :  { %917 = vmatpush1.bf16.msra.mxu0 %v1333_v57  ;;  %v1353_v57 = vld [vmem:[%s1754_s14 + $0x60] sm:$0xff]  }
 0x2e4   :  { %918 = vmatprep.subr.bf16.mxu0 %v1338_v59  ;;  %1235 = vmatprep.subr.bf16.mxu1 %v1353_v57  ;;  %v1355_v59 = vld [vmem:[%s1754_s14 + $0x68] sm:$0xff]  }
 0x2e5   :  { %1236 = vmatpush3.bf16.msra.mxu1 %v1354_v58 }
 0x2e6   :  { %1237 = vmatprep.subr.bf16.mxu1 %v1355_v59 }
 0x2e7   :  { %919 = vmatpush1.bf16.msra.mxu0 %v1336_v60  ;;  %v1356_v60 = vld [vmem:[%s1754_s14 + $0x28] sm:$0xff]  }
 0x2e8   :  { %920 = vmatprep.subr.bf16.mxu0 %v1341_v2  ;;  %v1357_v2 = vld [vmem:[%s1754_s14 + $0x70] sm:$0xff]  }
 0x2e9   :  { %1238 = vmatpush3.bf16.msra.mxu1 %v1356_v60 }
 0x2ea   :  { %1239 = vmatprep.subr.bf16.mxu1 %v1357_v2 }
 0x2eb   :  { %921 = vmatpush1.bf16.msra.mxu0 %v1339_v61  ;;  %v1358_v61 = vld [vmem:[%s1754_s14 + $0x30] sm:$0xff]  }
 0x2ec   :  { %922 = vmatprep.subr.bf16.mxu0 %v1344_v62  ;;  %v1359_v62 = vld [vmem:[%s1754_s14 + $0x78] sm:$0xff]  }
 0x2ed   :  { %1240 = vmatpush3.bf16.msra.mxu1 %v1358_v61 }
 0x2ee   :  { %1241 = vmatprep.subr.bf16.mxu1 %v1359_v62 }
 0x2ef   :  { %923 = vmatpush1.bf16.msra.mxu0 %v1342_v63  ;;  %v1360_v63 = vld [vmem:[%s1754_s14 + $0x38] sm:$0xff]  }
 0x2f1   :  { %1242 = vmatpush3.bf16.msra.mxu1 %v1360_v63 }
 0x384   :  { %v517_v1 = vpop.f32.mrb[8].mxu1 }
 0x385   :  { %v519_v3 = vpop.f32.mrb[9].mxu1 }
 0x386   :  { %v521_v4 = vpop.f32.mrb[10].mxu1 }
 0x387   :  { %v522_v5 = vpop.f32.mrb[11].mxu1 }
 0x38c   :  { %v581_v8 = vpop.f32.mrb[12].mxu1 }
 0x38d   :  { %v582_v9 = vadd.f32 %v581_v8, %v517_v1  ;;  %v583_v10 = vpop.f32.mrb[13].mxu1  ;;  %v720_v1 = vld [vmem:[%s1755_s13] sm:$0x3] }
 0x38e   :  { %v584_v11 = vadd.f32 %v583_v10, %v519_v3  ;;  %v585_v12 = vpop.f32.mrb[14].mxu1  ;;  %v725_v3 = vrot.slane %v720_v1, %v652_v15  ;;  %v729_v4 = vrot.slane %v720_v1, %v656_v17 }
 0x38f   :  { %v586_v13 = vpop.f32.mrb[15].mxu1 }
 0x394   :  { %v639_v20 = vpop.f32.mrb[16].mxu1 }
 0x395   :  { %v646_v21 = vadd.f32 %v639_v20, %v582_v9  ;;  %v641_v22 = vpop.f32.mrb[17].mxu1 }
 0x396   :  { %v647_v23 = vadd.f32 %v641_v22, %v584_v11  ;;  %v643_v24 = vpop.f32.mrb[18].mxu1 }
 0x397   :  { %v660_v25 = vadd.f32 %v653_v18, %v646_v21  ;;  %v644_v26 = vpop.f32.mrb[19].mxu1 }
 0x398   :  { %v661_v27 = vadd.f32 %v657_v7, %v647_v23 }
 0x399   :  { %v662_v28 = vmin.f32 %v660_v25, 20.0  ;;  %vm682_vm6 = vcmp.gt.f32.partialorder %v660_v25, 20.0 }
 0x39a   :  { %v663_v29 = vmin.f32 %v661_v27, 20.0  ;;  %vm683_vm7 = vcmp.gt.f32.partialorder %v661_v27, 20.0 }
 0x39b   :  { %v664_v30 = vmul.f32 1.442695, %v662_v28 }
 0x39c   :  { %v666_v31 = vmul.f32 1.442695, %v663_v29 }
 0x39d   :  { %1371 = vpow2.f32 %v664_v30 }
 0x39e   :  { %1373 = vpow2.f32 %v666_v31 }
 0x3a7   :  { %v1372_v32 = vpop.eup %1371 }
 0x3a8   :  { %v1374_v33 = vpop.eup %1373  ;;  %v668_v34 = vadd.f32 1.0, %v1372_v32 }
 0x3a9   :  { %v669_v35 = vadd.f32 1.0, %v1374_v33 }
 0x3aa   :  { %v670_v36 = vmul.f32 %v668_v34, %v668_v34 }
 0x3ab   :  { %v671_v37 = vmul.f32 %v669_v35, %v669_v35 }
 0x3ac   :  { %v676_v38 = vadd.f32 1.0, %v670_v36  ;;  %v1167_v0 = vadd.f32 -1.0, %v670_v36 }
 0x3ad   :  { %v677_v39 = vadd.f32 1.0, %v671_v37  ;;  %v1168_v40 = vadd.f32 -1.0, %v671_v37 }
 0x3ae   :  { %1375 = vrcp.f32 %v676_v38  ;;  %v674_v41 = vmul.f32 %v1167_v0, %v660_v25  ;;  %v1203_v38 = vld [vmem:[%s1756_s15] ss:$0 sm:$0xff] }
 0x3af   :  { %1377 = vrcp.f32 %v677_v39  ;;  %v675_v43 = vmul.f32 %v1168_v40, %v661_v27 }
 0x3b8   :  { %v1376_v42 = vpop.eup %1375 }
 0x3b9   :  { %v1378_v44 = vpop.eup %1377  ;;  %v680_v19 = vmul.f32 %v1376_v42, %v674_v41 }
 0x3ba   :  { %v681_v45 = vmul.f32 %v1378_v44, %v675_v43 }
 0x3bb   :  { %v684_v46 = vsel %vm682_vm6, %v660_v25, %v680_v19 }
 0x3bc   :  { %v685_v47 = vsel %vm683_vm7, %v661_v27, %v681_v45  ;;  %v718_v49 = vpack.c.bf16 %v684_v46, %v684_v46 }
 0x3bd   :  { %v719_v48 = vpack.c.bf16 %v685_v47, %v685_v47 }
 0x3bf   :  { %924 = vmatprep.mubr.bf16.mxu0 %v719_v48 }
 0x3c0   :  { %925 = vmatmul.mubr.bf16.vlgmr.msra.gmra.mrb[4].mxu0 %v718_v49 }
 0x493   :  { %v926_v5 = vpop.f32.mrb[4].mxu0 }
 0x494   :  { %v927_v8 = vadd.f32 %v926_v5, %v725_v3  ;;  %v928_v9 = vpop.f32.mrb[5].mxu0 }
 0x495   :  { %v929_v10 = vadd.f32 %v928_v9, %v729_v4  ;;  %v930_v11 = vpop.f32.mrb[6].mxu0 }
 0x496   :  { %v933_v12 = vmin.f32 %v927_v8, 20.0  ;;  %v931_v13 = vpop.f32.mrb[7].mxu0  ;;  %vm953_vm8 = vcmp.gt.f32.partialorder %v927_v8, 20.0 }
 0x497   :  { %v934_v16 = vmin.f32 %v929_v10, 20.0  ;;  %vm954_vm9 = vcmp.gt.f32.partialorder %v929_v10, 20.0 }
 0x498   :  { %v935_v18 = vmul.f32 1.442695, %v933_v12 }
 0x499   :  { %v937_v20 = vmul.f32 1.442695, %v934_v16 }
 0x49a   :  { %1379 = vpow2.f32 %v935_v18 }
 0x49b   :  { %1381 = vpow2.f32 %v937_v20 }
 0x4a4   :  { %v1380_v7 = vpop.eup %1379 }
 0x4a5   :  { %v1382_v21 = vpop.eup %1381  ;;  %v939_v22 = vadd.f32 1.0, %v1380_v7 }
 0x4a6   :  { %v940_v23 = vadd.f32 1.0, %v1382_v21 }
 0x4a7   :  { %v941_v15 = vmul.f32 %v939_v22, %v939_v22 }
 0x4a8   :  { %v942_v24 = vmul.f32 %v940_v23, %v940_v23 }
 0x4a9   :  { %v947_v6 = vadd.f32 1.0, %v941_v15  ;;  %v1201_v25 = vadd.f32 -1.0, %v941_v15 }
 0x4aa   :  { %v948_v17 = vadd.f32 1.0, %v942_v24  ;;  %v1202_v26 = vadd.f32 -1.0, %v942_v24 }
 0x4ab   :  { %1383 = vrcp.f32 %v947_v6  ;;  %v945_v27 = vmul.f32 %v1201_v25, %v927_v8 }
 0x4ac   :  { %1385 = vrcp.f32 %v948_v17  ;;  %v946_v29 = vmul.f32 %v1202_v26, %v929_v10 }
 0x4b5   :  { %v1384_v28 = vpop.eup %1383 }
 0x4b6   :  { %v1386_v30 = vpop.eup %1385  ;;  %v951_v31 = vmul.f32 %v1384_v28, %v945_v27 }
 0x4b7   :  { %v952_v32 = vmul.f32 %v1386_v30, %v946_v29 }
 0x4b8   :  { %v955_v33 = vsel %vm953_vm8, %v927_v8, %v951_v31 }
 0x4b9   :  { %v956_v34 = vsel %vm954_vm9, %v929_v10, %v952_v32  ;;  %v989_v36 = vpack.c.bf16 %v955_v33, %v955_v33 }
 0x4ba   :  { %v990_v35 = vpack.c.bf16 %v956_v34, %v956_v34 }
 0x4bc   :  { %1126 = vmatprep.mubr.bf16.mxu1 %v990_v35 }
 0x4bd   :  { %1127 = vmatmul.mubr.bf16.vlgmr.msra.gmra.mrb[20].mxu1 %v989_v36 }
 0x590   :  { %v1243_v37 = vpop.f32.mrb[20].mxu1 }
 0x591   :  { %v1244_v39 = vpop.f32.mrb[21].mxu1 }
 0x592   :  { %v1245_v0 = vadd.f32 %v1244_v39, %v1243_v37  ;;  %v1246_v40 = vpop.f32.mrb[22].mxu1 }
 0x593   :  { %v1247_v41 = vpop.f32.mrb[23].mxu1 }
 0x594   :  { %v1129_v42 = vadd.f32 %v1245_v0, %v1203_v38 }
 0x596   :  { %1135 = vst.msk [vmem:[%s1757_s16] sm:$0x3] %vm1134_vm10, %v1129_v42 }

</bundles_post_ra>
